<compile_context>
chip_gen: v7x
topology: tpu7x:2x2x1
jax: 0.10.0
libtpu: 0.0.40
codegen_flags: <defaults>
</compile_context>

<pallas_src>
import numpy as np
import jax
import jax.numpy as jnp
from jax.experimental import pallas as pl
from jax.experimental.pallas import tpu as pltpu

_VMEM_LIMIT = 32 * 1024 * 1024  # safe scoped-VMEM limit on v5e/v6e/v7x


def _pe_add_kernel(x_ref, pe_ref, o_ref):
    # 3D path : x (ts, D)   + pe (ts, D)
    # flat path: x (tb, tf) + pe (1, tf)   (sublane broadcast)
    o_ref[...] = x_ref[...] + pe_ref[...]


def positional_encoding_pe(d_model: int, max_len: int = 5000) -> jnp.ndarray:
    """pe buffer identical to the PyTorch __init__ construction; shape (max_len, d_model)."""
    position = np.arange(0, max_len, dtype=np.float32)[:, None]
    div_term = np.exp(np.arange(0, d_model, 2, dtype=np.float32)
                      * (-np.log(10000.0) / d_model))
    pe = np.zeros((max_len, d_model), dtype=np.float32)
    pe[:, 0::2] = np.sin(position * div_term)
    pe[:, 1::2] = np.cos(position * div_term[: d_model // 2])
    return jnp.asarray(pe)


def _round_up(x: int, m: int) -> int:
    return -(-x // m) * m


def _tile(total: int, unit: int, elem_bytes: int, budget_bytes: int) -> int:
    """Tile size along one axis: full extent if it fits the budget, otherwise the
    largest multiple of `unit` that does (cdiv grid masks the ragged tail)."""
    if total <= unit or total * elem_bytes <= budget_bytes:
        return total
    cap = max(unit, (budget_bytes // max(1, elem_bytes)) // unit * unit)
    return min(cap, max(unit, (total // unit) * unit))


def positional_encoding_forward(x: jnp.ndarray, pe: jnp.ndarray, *,
                                block_bytes: int = 4 * 1024 * 1024) -> jnp.ndarray:
    """x: (B, S, D); pe: (max_len, D). Returns x + pe[:S] broadcast over B."""
    B, S, D = x.shape
    max_len = pe.shape[0]
    assert S <= max_len, f"sequence length {S} exceeds positional table max_len {max_len}"
    itemsize = x.dtype.itemsize
    sub = max(8, 32 // itemsize)          # packed sublane rows: 8 f32 / 16 bf16 / 32 int8
    cost = pl.CostEstimate(flops=B * S * D, transcendentals=0,
                           bytes_accessed=(2 * B * S * D + S * D) * itemsize)

    if D % 128 == 0:
        # ---- 3D path: lane dim already dense; tile the sequence dimension. ----
        # Never cast the full (max_len, D) table; only the rows actually used.
        pe_in = pe if pe.dtype == x.dtype else pe[:S].astype(x.dtype)
        ts = _tile(S, sub, D * itemsize, block_bytes)
        if B == 1 and ts >= S and S > sub:
            # Expose >= 2 independent blocks so both v7x TensorCores get work.
            ts = max(sub, _round_up(-(-S // 2), sub))
        num_s = pl.cdiv(S, ts)
        return pl.pallas_call(
            _pe_add_kernel,
            out_shape=jax.ShapeDtypeStruct((B, S, D), x.dtype),
            grid_spec=pltpu.PrefetchScalarGridSpec(
                num_scalar_prefetch=0,
                grid=(num_s, B),                                   # batch innermost: pe DMA reused
                in_specs=[
                    pl.BlockSpec((None, ts, D), lambda s, b: (b, s, 0)),  # batch dim squeezed
                    pl.BlockSpec((ts, D), lambda s, b: (s, 0)),           # pe sliced by BlockSpec
                ],
                out_specs=pl.BlockSpec((None, ts, D), lambda s, b: (b, s, 0)),
            ),
            cost_estimate=cost,
            compiler_params=pltpu.CompilerParams(
                dimension_semantics=("parallel", "parallel"),
                vmem_limit_bytes=_VMEM_LIMIT),
        )(x, pe_in)

    # ---- Flat path: D not a multiple of 128 -> flatten (S, D) into one lane-dense
    # axis so output stores are not lane-masked; tile both batch and S*D. ----
    F = S * D
    xf = x.reshape(B, F)
    pe_rows = pe[:S] if pe.dtype == x.dtype else pe[:S].astype(x.dtype)
    pef = pe_rows.reshape(1, F)
    tb = B if B <= 256 else 256                                    # 256 % {8,16,32} == 0
    tf = _tile(F, 128, tb * itemsize, block_bytes)
    num_b, num_f = pl.cdiv(B, tb), pl.cdiv(F, tf)
    outf = pl.pallas_call(
        _pe_add_kernel,
        out_shape=jax.ShapeDtypeStruct((B, F), x.dtype),
        grid_spec=pltpu.PrefetchScalarGridSpec(
            num_scalar_prefetch=0,
            grid=(num_f, num_b),                                   # batch innermost: pe DMA reused
            in_specs=[
                pl.BlockSpec((tb, tf), lambda f, b: (b, f)),
                pl.BlockSpec((1, tf), lambda f, b: (0, f)),
            ],
            out_specs=pl.BlockSpec((tb, tf), lambda f, b: (b, f)),
        ),
        cost_estimate=cost,
        compiler_params=pltpu.CompilerParams(
            dimension_semantics=("parallel", "parallel"),
            vmem_limit_bytes=_VMEM_LIMIT),
    )(xf, pef)
    return outf.reshape(B, S, D)


if __name__ == "__main__":
    def _run_case(B, S, D, max_len, dtype=jnp.float32, **kw):
        key = jax.random.PRNGKey(0)
        x = jax.random.normal(key, (B, S, D), dtype=jnp.float32).astype(dtype)
        pe = positional_encoding_pe(D, max_len=max_len)
        ref = x + pe[:S].astype(dtype)[None, :, :]
        out = jax.block_until_ready(positional_encoding_forward(x, pe, **kw))
        tol = 1e-5 if dtype == jnp.float32 else 2e-2
        np.testing.assert_allclose(np.asarray(out, dtype=np.float32),
                                   np.asarray(ref, dtype=np.float32),
                                   rtol=tol, atol=tol)

    # Flat (lane-dense) path: d_model=32 not a multiple of 128 (F=256, single tile).
    _run_case(2, 8, 32, 64)
    # Flat path, ragged F tiling: F=280, tiny budget -> tf=128, cdiv grid masks the tail.
    _run_case(2, 7, 40, 64, block_bytes=2 * 128 * 4)
    # 3D path, single sequence tile, full pe table sliced via BlockSpec index_map.
    _run_case(2, 16, 128, 64)
    # 3D path, ragged sequence tiling: S=10, tiny budget -> ts=8, last block masked.
    _run_case(2, 10, 128, 64, block_bytes=8 * 128 * 4)
    # 3D path, B==1: tile halved so the grid exposes 2 blocks (v7x two-core case).
    _run_case(1, 64, 128, 128)
    # bf16 activations: dtype-aware sublane unit (16 rows) and pe[:S]-only cast.
    _run_case(2, 16, 128, 64, dtype=jnp.bfloat16)

    print("KERNEL_OK")
</pallas_src>

<mosaic_0001>
module attributes {stable_mosaic.version = 11 : i64} {
  func.func @_pe_add_kernel(%arg0: i32, %arg1: i32, %arg2: memref<2x256xf32, #tpu.memory_space<vmem>>, %arg3: memref<1x256xf32, #tpu.memory_space<vmem>>, %arg4: memref<2x256xf32, #tpu.memory_space<vmem>>) attributes {dimension_semantics = [#tpu.dimension_semantics<parallel>, #tpu.dimension_semantics<parallel>], iteration_bounds = array<i64: 1, 1>, scalar_prefetch = 0 : i64, scratch_operands = 0 : i64, tpu.core_type = #tpu.core_type<tc>, window_params = [{transform_indices = @transform_0, window_bounds = array<i64: 2, 256>}, {transform_indices = @transform_1, window_bounds = array<i64: 1, 256>}, {transform_indices = @transform_2, window_bounds = array<i64: 2, 256>}]} {
    %c0 = arith.constant 0 : index
    %c0_0 = arith.constant 0 : index
    %0 = vector.load %arg2[%c0, %c0_0] : memref<2x256xf32, #tpu.memory_space<vmem>>, vector<2x256xf32>
    %c0_1 = arith.constant 0 : index
    %c0_2 = arith.constant 0 : index
    %1 = vector.load %arg3[%c0_1, %c0_2] : memref<1x256xf32, #tpu.memory_space<vmem>>, vector<1x256xf32>
    %2 = vector.broadcast %1 : vector<1x256xf32> to vector<2x256xf32>
    %3 = arith.addf %0, %2 : vector<2x256xf32>
    %c0_3 = arith.constant 0 : index
    %c0_4 = arith.constant 0 : index
    %4 = vector.load %arg4[%c0_3, %c0_4] : memref<2x256xf32, #tpu.memory_space<vmem>>, vector<2x256xf32>
    tpu.vector_store %arg4[%c0_3, %c0_4], %3 {strides = array<i32>} : memref<2x256xf32, #tpu.memory_space<vmem>>, vector<2x256xf32>,
    return
  }
  func.func @transform_0(%arg0: i32, %arg1: i32) -> (i32, i32) {
    %c0_i32 = arith.constant 0 : i32
    return %arg1, %arg0 : i32, i32
  }
  func.func @transform_1(%arg0: i32, %arg1: i32) -> (i32, i32) {
    %c0_i32 = arith.constant 0 : i32
    %c0_i32_0 = arith.constant 0 : i32
    return %c0_i32, %arg0 : i32, i32
  }
  func.func @transform_2(%arg0: i32, %arg1: i32) -> (i32, i32) {
    %c0_i32 = arith.constant 0 : i32
    return %arg1, %arg0 : i32, i32
  }
}

</mosaic_0001>

<bundles_post_ra>
// kernel: tpu_custom_call.1
= control target key start
LH: loop header
LB: loop body
LE: loop exit
PB: predicated region body
PF: predicated region fallthrough
CT: control target
= control target key end

     0   :  { %7 = vsyncpa [#allocation3], 0  ;;  %s157_s0 = inlined_call_operand.hbm [shape: f32[2,256], index: 0, kind: input, shape index: {}]   ;;  %s158_s1 = inlined_call_operand.vmem [shape: f32[1,256], index: 1, kind: input, shape index: {}]   ;;  %s159_s2 = inlined_call_operand.hbm [shape: f32[2,256], index: 2, kind: output, shape index: {}]  }
   0x1   :  { %8 = vsyncpa [#allocation4], 0  ;;  %s112_s9 = smov [#allocation2]   ;;  %s64_s13 = scalar_lea.hbm %s157_s0, 64 }
   0x2   :  { %s15_s10 = sshll.u32 %s112_s9, 4  ;;  %p65_p0 = scmp.ne.s32.totalorder %s157_s0, %s64_s13  ;;  %s16_s10 = int_to_ptr.vmem [resolvable:$true] %s15_s10 }
   0x3   :  { %p68_p1 = scmp.lt.u32.totalorder %s64_s13, %s157_s0 }
   0x5   :  { %p70_p2 = pnand %p68_p1, %p65_p0 }
   0x7   :  { %73 = shalt.err (!%p70_p2)
}
   0x8   :  { %s74_s18 = scalar_lea.vmem %s16_s10, 64  ;;  %p79_p4 = scmp.lt.s32.totalorder %s16_s10, %s16_s10 }
   0x9   :  { %p75_p3 = scmp.ne.s32.totalorder %s16_s10, %s74_s18  ;;  %p80_p5 = scmp.lt.s32.totalorder %s74_s18, %s74_s18 }
   0xb   :  { %p81_p6 = por %p80_p5, %p79_p4 }
   0xd   :  { %p82_p7 = pnand %p81_p6, %p75_p3 }
   0xf   :  { %85 = shalt.err (!%p82_p7)
}
  0x10   :  { %18 = dma.hbm_to_vmem [thread:$0]  %s157_s0, 64, %s16_s10, [#allocation3]  }
  0x11   :  { %108 = dma.done.wait [#allocation3], 64  }
  0x12   :  { %109 = vsyncadd [#allocation3], 4294967232  ;;  %v27_v0 = vlaneseq  ;;  %v113_v1 = vmov 1983009808   ;;  %v25_v7 = vld [vmem:[%s158_s1] sm:$0x3] }
  0x13   :  { %v37_v2 = vunpack.c.l.s4 %v113_v1  ;;  %v24_v12 = vld [vmem:[#allocation2] sm:$0xf]  ;;  %s114_s23 = smov [#allocation5]  }
  0x14   :  { %v28_v3 = vshrl.u32 %v27_v0, 7  ;;  %s52_s0 = sshll.u32 %s114_s23, 4  ;;  %s53_s0 = int_to_ptr.vmem [resolvable:$true] %s52_s0 }
  0x15   :  { %v38_v6 = vunpack.c.0.s8 %v37_v2  ;;  %s86_s24 = scalar_lea.vmem %s53_s0, 64  ;;  %p91_p9 = scmp.lt.s32.totalorder %s53_s0, %s53_s0 }
  0x16   :  { %v29_v4 = vsub.s32 0, %v28_v3  ;;  %v33_v5 = vsub.s32 1, %v28_v3  ;;  %p87_p8 = scmp.ne.s32.totalorder %s53_s0, %s86_s24  ;;  %p92_p10 = scmp.lt.s32.totalorder %s86_s24, %s86_s24 }
  0x17   :  { %v41_v10 = vsub.s32 %v38_v6, %v28_v3 }
  0x18   :  { %v30_v8 = vrot.slane %v25_v7, %v29_v4  ;;  %v34_v9 = vrot.slane %v25_v7, %v33_v5  ;;  %p93_p11 = por %p92_p10, %p91_p9 }
  0x1a   :  { %v35_v11 = vcombine.low %v30_v8, %v34_v9  ;;  %p94_p12 = pnand %p93_p11, %p87_p8 }
  0x1c   :  { %v42_v13 = vrot.slane %v35_v11, %v41_v10 }
  0x1e   :  { %v44_v14 = vadd.f32 %v42_v13, %v24_v12 }
  0x20   :  { %45 = vst [vmem:[#allocation5] sm:$0xf] %v44_v14 }
  0x21   :  { %97 = shalt.err (!%p94_p12)
}
  0x22   :  { %s98_s26 = scalar_lea.hbm %s159_s2, 64 }
  0x23   :  { %p99_p13 = scmp.ne.s32.totalorder %s159_s2, %s98_s26  ;;  %p102_p0 = scmp.lt.u32.totalorder %s98_s26, %s159_s2 }
  0x25   :  { %p104_p1 = pnand %p102_p0, %p99_p13 }
  0x27   :  { %107 = shalt.err (!%p104_p1)
}
  0x28   :  { %55 = dma.vmem_to_hbm [thread:$0]  %s53_s0, 64, %s159_s2, [#allocation4]  }
  0x29   :  { %110 = dma.done.wait [#allocation4], 64  }
  0x2a   :  { %111 = vsyncadd [#allocation4], 4294967232 }
  0x2b   :  { %59 = vsyncpa [#allocation3], 1 }
  0x2c   :  { %60 = vsyncpa [#allocation4], 1 }

</bundles_post_ra>
